<compile_context>
chip_gen: v5e
topology: v5e:2x2
jax: 0.10.0
libtpu: 0.0.40
codegen_flags: <defaults>
</compile_context>

<pallas_src>
import jax
import jax.numpy as jnp
from jax.experimental import pallas as pl
from jax.experimental.pallas import tpu as pltpu


def _round_up(x, m):
    return ((x + m - 1) // m) * m


def _vmem_capacity_bytes():
    """Best-effort physical VMEM query; falls back to the v7x 64 MiB/TC floor."""
    try:
        cap = getattr(pltpu.get_tpu_info(), "vmem_capacity_bytes", None)
        if cap:
            return int(cap)
    except Exception:
        pass
    return 64 * 1024 * 1024


def _make_proj_kernel(inv_hw):
    def proj_kernel(x_ref, w1_ref, b1_ref, w2_ref, b2_ref, o_ref, acc_ref):
        # x_ref : (b_tile, C, hw_tile)   -- native NCHW tile, spatial (HW) on lanes
        # w1_ref: (C, hid)       b1_ref: (1, hid)
        # w2_ref: (hid, out_pad) b2_ref: (1, out_pad)   (columns zero-padded to 128k)
        # o_ref : (b_tile, out_pad)
        # acc_ref: (b_tile, C) f32 scratch -- spatial-sum accumulator (C on lanes)
        s = pl.program_id(1)

        @pl.when(s == 0)
        def _():
            acc_ref[...] = jnp.zeros_like(acc_ref)

        # AdaptiveAvgPool2d((1,1)): spatial *sum* of this tile.  The lane-axis reduce
        # runs on the XLU (its own issue slot), overlapping the HBM x stream.
        acc_ref[...] += jnp.sum(x_ref[...].astype(jnp.float32), axis=-1)

        @pl.when(s == pl.num_programs(1) - 1)
        def _():
            pooled = acc_ref[...] * inv_hw                        # (b_tile, C), f32
            # mlp_drop[0]: Linear(hid, hid) + ReLU.  Operands in the weight dtype
            # (bf16 weights -> single-pass MXU); accumulate in f32.
            h = jnp.dot(pooled.astype(w1_ref.dtype), w1_ref[...],
                        preferred_element_type=jnp.float32)
            h = jnp.maximum(h + b1_ref[...].astype(jnp.float32), 0.0)
            # mlp_drop[2]: Linear(hid, out)
            out = jnp.dot(h.astype(w2_ref.dtype), w2_ref[...],
                          preferred_element_type=jnp.float32)
            out = out + b2_ref[...].astype(jnp.float32)
            o_ref[...] = out.astype(o_ref.dtype)

    return proj_kernel


def proj_forward(x, w1, b1, w2, b2, *, b_tile=None, hw_tile=None,
                 vmem_limit_bytes=None):
    """Proj.forward (mlp=False, normlinear=False).

    x : (B, C, H, W) NCHW -- consumed directly (no wrapper transpose).
    w1: (C, hid), b1: (1, hid), w2: (hid, out), b2: (1, out)  -- Linear weights stored
        pre-transposed as (in_features, out_features).
    Pass x (and the weights) as bf16 to halve the dominant HBM traffic.
    """
    B, C, H, W = x.shape
    HW_true = H * W
    hid = w1.shape[1]
    out_ch = w2.shape[1]

    # (B, C, H, W) -> (B, C, HW): merge of the two minor dims of a contiguous array
    # (no transpose; at worst a cheap relayout vs. a full extra HBM pass for NHWC).
    x3 = x.reshape(B, C, HW_true)
    HW_len = HW_true
    x_itemsize = x3.dtype.itemsize

    # ---- batch tile ---------------------------------------------------------------
    if b_tile is None:
        b_tile = min(128, B)
        if B >= 16:
            # >=2 steps on the "parallel" B axis so v7x's two TensorCores both work.
            b_tile = min(b_tile, _round_up(-(-B // 2), 8))
    b_tile = max(1, min(int(b_tile), B))
    if b_tile != B and b_tile % 8:
        # Output block's sublane dim must be a multiple of 8 unless it spans all of B.
        b_tile = min(B, _round_up(b_tile, 8))
        if b_tile % 8 and b_tile != B:
            b_tile = B
    grid_b = -(-B // b_tile)           # partial last block: OOB output rows are masked

    # ---- spatial (lane) tile --------------------------------------------------------
    vmem_cap = _vmem_capacity_bytes()
    # Per x-buffer budget: ~1/8 of physical VMEM (8 MiB on v7x, 16 MiB on v5e/v6e),
    # leaving headroom for double buffering plus the resident weight/out blocks.
    budget = max(2 * 1024 * 1024, min(16 * 1024 * 1024, vmem_cap // 8))
    c_rows = _round_up(C, 8)           # sublane-padded C rows of an x block

    def x_block_vmem(t):               # lane/sublane-padded VMEM footprint of one x block
        return b_tile * c_rows * _round_up(t, 128) * x_itemsize

    if hw_tile is not None:
        hw_tile = int(hw_tile)
        if hw_tile % 128 or HW_len % hw_tile:   # must be a 128-multiple dividing HW...
            hw_tile = HW_len                    # ...otherwise fall back to full extent
    elif HW_len % 128 == 0:
        n128 = HW_len // 128
        units = max(1, min(n128, budget // max(1, x_block_vmem(128))))
        while n128 % units:                     # hw_tile must divide HW exactly
            units -= 1
        hw_tile = 128 * units
    else:
        if x_block_vmem(HW_len) <= 4 * budget:
            hw_tile = HW_len                    # full-extent lane block (legal any HW)
        else:
            # Rare: huge, non-128-aligned HW.  Zero-pad HW (one extra XLA pass over x;
            # zeros do not perturb the spatial sum -- division uses the true HW).
            HW_len = _round_up(HW_true, 128)
            x3 = jnp.pad(x3, ((0, 0), (0, 0), (0, HW_len - HW_true)))
            n128 = HW_len // 128
            units = max(1, min(n128, budget // max(1, x_block_vmem(128))))
            while n128 % units:
                units -= 1
            hw_tile = 128 * units
    grid_hw = HW_len // hw_tile

    # ---- lane-dense output stores -----------------------------------------------------
    out_pad = _round_up(out_ch, 128)
    if out_pad != out_ch:
        w2 = jnp.pad(w2, ((0, 0), (0, out_pad - out_ch)))
        b2 = jnp.pad(b2, ((0, 0), (0, out_pad - out_ch)))

    # ---- VMEM limit from padded footprints -------------------------------------------
    w_isz = w1.dtype.itemsize
    weights_vmem = (c_rows * _round_up(hid, 128) * w_isz
                    + 8 * _round_up(hid, 128) * b1.dtype.itemsize
                    + _round_up(hid, 8) * out_pad * w2.dtype.itemsize
                    + 8 * out_pad * b2.dtype.itemsize)
    out_vmem = _round_up(b_tile, 8) * out_pad * x.dtype.itemsize
    acc_vmem = _round_up(b_tile, 8) * _round_up(C, 128) * 4
    needed = 2 * (x_block_vmem(hw_tile) + weights_vmem + out_vmem) + acc_vmem
    if vmem_limit_bytes is None:
        vmem_limit_bytes = min(max(needed + (4 << 20), 32 << 20), vmem_cap)

    out_padded = pl.pallas_call(
        _make_proj_kernel(1.0 / HW_true),
        out_shape=jax.ShapeDtypeStruct((B, out_pad), x.dtype),
        grid_spec=pltpu.PrefetchScalarGridSpec(
            num_scalar_prefetch=0,
            grid=(grid_b, grid_hw),
            in_specs=[
                pl.BlockSpec((b_tile, C, hw_tile), lambda b, s: (b, 0, s)),
                # Weights/biases stay resident across both grid axes.
                pl.BlockSpec((C, hid), lambda b, s: (0, 0)),
                pl.BlockSpec((1, hid), lambda b, s: (0, 0)),
                pl.BlockSpec((hid, out_pad), lambda b, s: (0, 0)),
                pl.BlockSpec((1, out_pad), lambda b, s: (0, 0)),
            ],
            out_specs=pl.BlockSpec((b_tile, out_pad), lambda b, s: (b, 0)),
            scratch_shapes=[pltpu.VMEM((b_tile, C), jnp.float32)],
        ),
        compiler_params=pltpu.CompilerParams(
            dimension_semantics=("parallel", "arbitrary"),
            vmem_limit_bytes=int(vmem_limit_bytes),
        ),
        cost_estimate=pl.CostEstimate(
            flops=B * HW_len * C                          # pooling adds
            + 2 * B * (C * hid + hid * out_pad),          # two matmuls
            transcendentals=0,
            bytes_accessed=B * HW_len * C * x_itemsize    # dominated by streaming x
            + (C * hid + hid * out_pad) * w_isz
            + B * out_pad * x.dtype.itemsize,
        ),
    )(x3, w1, b1, w2, b2)

    return out_padded[:, :out_ch]


def reference_forward(x, w1, b1, w2, b2):
    pooled = jnp.mean(x, axis=(2, 3))                # AdaptiveAvgPool2d((1,1)) + squeeze
    h = jnp.maximum(pooled @ w1 + b1, 0.0)           # Linear + ReLU
    return h @ w2 + b2                               # Linear


if __name__ == "__main__":
    # Proj(in_channel=32, hid_channel=32, out_channel=16, mlp=False, normlinear=False)
    # (mlp=False path requires in_channel == hid_channel for mlp_drop's first Linear.)
    B, C, H, W = 2, 32, 16, 16                       # HW = 256 -> two 128-lane tiles
    hid, out_ch = 32, 16

    key = jax.random.PRNGKey(0)
    kx, kw1, kb1, kw2, kb2 = jax.random.split(key, 5)

    x = jax.random.normal(kx, (B, C, H, W), dtype=jnp.float32)

    # nn.Linear-style deterministic init: U(-1/sqrt(in), 1/sqrt(in)).
    # Weights stored pre-transposed as (in_features, out_features).
    lim1 = 1.0 / jnp.sqrt(jnp.float32(hid))
    w1 = jax.random.uniform(kw1, (hid, hid), jnp.float32, -lim1, lim1)
    b1 = jax.random.uniform(kb1, (1, hid), jnp.float32, -lim1, lim1)

    lim2 = 1.0 / jnp.sqrt(jnp.float32(hid))
    w2 = jax.random.uniform(kw2, (hid, out_ch), jnp.float32, -lim2, lim2)
    b2 = jax.random.uniform(kb2, (1, out_ch), jnp.float32, -lim2, lim2)

    # hw_tile=128 -> 2 reduction steps: exercises the zero/accumulate/finalize pipeline.
    y = proj_forward(x, w1, b1, w2, b2, hw_tile=128)
    y = jax.block_until_ready(y)

    y_ref = reference_forward(x, w1, b1, w2, b2)
    assert y.shape == (B, out_ch), y.shape
    assert jnp.allclose(y, y_ref, atol=1e-5, rtol=1e-5), "mismatch vs reference"

    # TODO(synk): mlp=True (extra Linear+ReLU) and normlinear=True (NormedLinear:
    # normalize(x,dim=1) @ normalize(W,dim=0)) variants are not exercised here; both
    # would slot into the pl.when(last-step) epilogue of the same kernel.
    print("KERNEL_OK")
</pallas_src>

<mosaic_0001>
module attributes {stable_mosaic.version = 11 : i64} {
  func.func @proj_kernel(%arg0: i32, %arg1: i32, %arg2: memref<2x32x128xf32, #tpu.memory_space<vmem>>, %arg3: memref<32x32xf32, #tpu.memory_space<vmem>>, %arg4: memref<1x32xf32, #tpu.memory_space<vmem>>, %arg5: memref<32x128xf32, #tpu.memory_space<vmem>>, %arg6: memref<1x128xf32, #tpu.memory_space<vmem>>, %arg7: memref<2x128xf32, #tpu.memory_space<vmem>>, %arg8: memref<2x32xf32, #tpu.memory_space<vmem>>) attributes {dimension_semantics = [#tpu.dimension_semantics<parallel>, #tpu.dimension_semantics<arbitrary>], iteration_bounds = array<i64: 1, 2>, scalar_prefetch = 0 : i64, scratch_operands = 1 : i64, tpu.core_type = #tpu.core_type<tc>, window_params = [{transform_indices = @transform_0, window_bounds = array<i64: 2, 32, 128>}, {pipeline_mode = #tpu.pipeline_mode<synchronous>, transform_indices = @transform_1, window_bounds = array<i64: 32, 32>}, {pipeline_mode = #tpu.pipeline_mode<synchronous>, transform_indices = @transform_2, window_bounds = array<i64: 1, 32>}, {pipeline_mode = #tpu.pipeline_mode<synchronous>, transform_indices = @transform_3, window_bounds = array<i64: 32, 128>}, {pipeline_mode = #tpu.pipeline_mode<synchronous>, transform_indices = @transform_4, window_bounds = array<i64: 1, 128>}, {transform_indices = @transform_5, window_bounds = array<i64: 2, 128>}]} {
    %c0_i32 = arith.constant 0 : i32
    %0 = arith.cmpi eq, %arg1, %c0_i32 : i32
    %1 = arith.extui %0 : i1 to i32
    %c0_i32_0 = arith.constant 0 : i32
    %2 = arith.cmpi ne, %1, %c0_i32_0 : i32
    scf.if %2 {
      %cst_8 = arith.constant 0.000000e+00 : f32
      %11 = vector.broadcast %cst_8 : f32 to vector<2x32xf32>
      %c0_9 = arith.constant 0 : index
      %c0_10 = arith.constant 0 : index
      %12 = vector.load %arg8[%c0_9, %c0_10] : memref<2x32xf32, #tpu.memory_space<vmem>>, vector<2x32xf32>
      tpu.vector_store %arg8[%c0_9, %c0_10], %11 {strides = array<i32>} : memref<2x32xf32, #tpu.memory_space<vmem>>, vector<2x32xf32>,
    } else {
    }
    %c0 = arith.constant 0 : index
    %c0_1 = arith.constant 0 : index
    %3 = vector.load %arg8[%c0, %c0_1] : memref<2x32xf32, #tpu.memory_space<vmem>>, vector<2x32xf32>
    %c0_2 = arith.constant 0 : index
    %c0_3 = arith.constant 0 : index
    %c0_4 = arith.constant 0 : index
    %4 = vector.load %arg2[%c0_2, %c0_3, %c0_4] : memref<2x32x128xf32, #tpu.memory_space<vmem>>, vector<2x32x128xf32>
    %cst = arith.constant dense<0.000000e+00> : vector<2x32xf32>
    %5 = vector.multi_reduction <add>, %4, %cst [2] : vector<2x32x128xf32> to vector<2x32xf32>
    %6 = arith.addf %3, %5 : vector<2x32xf32>
    %c0_5 = arith.constant 0 : index
    %c0_6 = arith.constant 0 : index
    %7 = vector.load %arg8[%c0_5, %c0_6] : memref<2x32xf32, #tpu.memory_space<vmem>>, vector<2x32xf32>
    tpu.vector_store %arg8[%c0_5, %c0_6], %6 {strides = array<i32>} : memref<2x32xf32, #tpu.memory_space<vmem>>, vector<2x32xf32>,
    %c1_i32 = arith.constant 1 : i32
    %8 = arith.cmpi eq, %arg1, %c1_i32 : i32
    %9 = arith.extui %8 : i1 to i32
    %c0_i32_7 = arith.constant 0 : i32
    %10 = arith.cmpi ne, %9, %c0_i32_7 : i32
    scf.if %10 {
      %c0_8 = arith.constant 0 : index
      %c0_9 = arith.constant 0 : index
      %11 = vector.load %arg8[%c0_8, %c0_9] : memref<2x32xf32, #tpu.memory_space<vmem>>, vector<2x32xf32>
      %cst_10 = arith.constant 3.906250e-03 : f32
      %12 = vector.broadcast %cst_10 : f32 to vector<2x32xf32>
      %13 = arith.mulf %11, %12 : vector<2x32xf32>
      %c0_11 = arith.constant 0 : index
      %c0_12 = arith.constant 0 : index
      %14 = vector.load %arg3[%c0_11, %c0_12] : memref<32x32xf32, #tpu.memory_space<vmem>>, vector<32x32xf32>
      %cst_13 = arith.constant dense<0.000000e+00> : vector<2x32xf32>
      %15 = tpu.matmul %13, %14, %cst_13 {dimension_numbers = #tpu.dot_dimension_numbers<[1], [0], [0], [1], [0, 0, 1, 1], [], []>} : vector<2x32xf32>, vector<32x32xf32>, vector<2x32xf32> -> vector<2x32xf32>
      %c0_14 = arith.constant 0 : index
      %c0_15 = arith.constant 0 : index
      %16 = vector.load %arg4[%c0_14, %c0_15] : memref<1x32xf32, #tpu.memory_space<vmem>>, vector<1x32xf32>
      %17 = vector.broadcast %16 : vector<1x32xf32> to vector<2x32xf32>
      %18 = arith.addf %15, %17 : vector<2x32xf32>
      %cst_16 = arith.constant 0.000000e+00 : f32
      %19 = vector.broadcast %cst_16 : f32 to vector<2x32xf32>
      %20 = arith.maximumf %18, %19 : vector<2x32xf32>
      %c0_17 = arith.constant 0 : index
      %c0_18 = arith.constant 0 : index
      %21 = vector.load %arg5[%c0_17, %c0_18] : memref<32x128xf32, #tpu.memory_space<vmem>>, vector<32x128xf32>
      %cst_19 = arith.constant dense<0.000000e+00> : vector<2x128xf32>
      %22 = tpu.matmul %20, %21, %cst_19 {dimension_numbers = #tpu.dot_dimension_numbers<[1], [0], [0], [1], [0, 0, 1, 1], [], []>} : vector<2x32xf32>, vector<32x128xf32>, vector<2x128xf32> -> vector<2x128xf32>
      %c0_20 = arith.constant 0 : index
      %c0_21 = arith.constant 0 : index
      %23 = vector.load %arg6[%c0_20, %c0_21] : memref<1x128xf32, #tpu.memory_space<vmem>>, vector<1x128xf32>
      %24 = vector.broadcast %23 : vector<1x128xf32> to vector<2x128xf32>
      %25 = arith.addf %22, %24 : vector<2x128xf32>
      %c0_22 = arith.constant 0 : index
      %c0_23 = arith.constant 0 : index
      %26 = vector.load %arg7[%c0_22, %c0_23] : memref<2x128xf32, #tpu.memory_space<vmem>>, vector<2x128xf32>
      tpu.vector_store %arg7[%c0_22, %c0_23], %25 {strides = array<i32>} : memref<2x128xf32, #tpu.memory_space<vmem>>, vector<2x128xf32>,
    } else {
    }
    return
  }
  func.func @transform_0(%arg0: i32, %arg1: i32) -> (i32, i32, i32) {
    %c0_i32 = arith.constant 0 : i32
    %c0_i32_0 = arith.constant 0 : i32
    return %arg0, %c0_i32, %arg1 : i32, i32, i32
  }
  func.func @transform_1(%arg0: i32, %arg1: i32) -> (i32, i32) {
    %c0_i32 = arith.constant 0 : i32
    %c0_i32_0 = arith.constant 0 : i32
    %c0_i32_1 = arith.constant 0 : i32
    return %c0_i32, %c0_i32_0 : i32, i32
  }
  func.func @transform_2(%arg0: i32, %arg1: i32) -> (i32, i32) {
    %c0_i32 = arith.constant 0 : i32
    %c0_i32_0 = arith.constant 0 : i32
    %c0_i32_1 = arith.constant 0 : i32
    return %c0_i32, %c0_i32_0 : i32, i32
  }
  func.func @transform_3(%arg0: i32, %arg1: i32) -> (i32, i32) {
    %c0_i32 = arith.constant 0 : i32
    %c0_i32_0 = arith.constant 0 : i32
    %c0_i32_1 = arith.constant 0 : i32
    return %c0_i32, %c0_i32_0 : i32, i32
  }
  func.func @transform_4(%arg0: i32, %arg1: i32) -> (i32, i32) {
    %c0_i32 = arith.constant 0 : i32
    %c0_i32_0 = arith.constant 0 : i32
    %c0_i32_1 = arith.constant 0 : i32
    return %c0_i32, %c0_i32_0 : i32, i32
  }
  func.func @transform_5(%arg0: i32, %arg1: i32) -> (i32, i32) {
    %c0_i32 = arith.constant 0 : i32
    %c0_i32_0 = arith.constant 0 : i32
    return %arg0, %c0_i32 : i32, i32
  }
}

</mosaic_0001>

<bundles_post_ra>
// kernel: tpu_custom_call.1
= control target key start
LH: loop header
LB: loop body
LE: loop exit
PB: predicated region body
PF: predicated region fallthrough
CT: control target
= control target key end

     0   :  { %10 = vsyncpa [#allocation4], 0  ;;  %s976_s0 = inlined_call_operand.hbm [shape: f32[2,32,256], index: 0, kind: input, shape index: {}]   ;;  %s977_s1 = inlined_call_operand.hbm [shape: f32[32,32], index: 1, kind: input, shape index: {}]   ;;  %s978_s2 = inlined_call_operand.vmem [shape: f32[1,32], index: 2, kind: input, shape index: {}]   ;;  %s979_s3 = inlined_call_operand.hbm [shape: f32[32,128], index: 3, kind: input, shape index: {}]   ;;  %s980_s4 = inlined_call_operand.vmem [shape: f32[1,128], index: 4, kind: input, shape index: {}]   ;;  %s981_s5 = inlined_call_operand.hbm [shape: f32[2,128], index: 5, kind: output, shape index: {}]  }
   0x1   :  { %12 = vsyncpa [#allocation4 + $0x1], 0 }
   0x2   :  { %13 = vsyncpa [#allocation7], 0 }
   0x3   :  { %14 = vsyncpa [#allocation5], 0  ;;  %s842_s18 = smov 0   ;;  %s844_s19 = smov 0  }
   0x4   :  { %s846_s20 = smov 0   ;;  %s848_s21 = smov 0  }
   0x5   :  { %s850_s22 = smov 0   ;;  %s852_s23 = smov 0  }
   0x6 LB: > { %s982_s24 = sadd.s32 4294967295, %s803_s23   ;;  %p54_p0 = scmp.ne.s32.totalorder %s787_s19, %s783_s18  ;;  %s803_s23 = sphi %s852_s23, %s20_s23   ;;  %s799_s22 = sphi %s850_s22, %s994_s22   ;;  %s795_s21 = sphi %s848_s21, %s993_s21   ;;  %s791_s20 = sphi %s846_s20, %s992_s20   ;;  %s787_s19 = sphi %s844_s19, %s991_s19   ;;  %s783_s18 = sphi %s842_s18, %s990_s18  }
   0x7   : > { %p874_p1 = scmp.eq.s32.totalorder %s982_s24, 0  ;;  %p520_p2 = scmp.ge.s32.totalorder %s803_s23, 1 }
   0x8   : > { %p175_p3 = scmp.lt.s32.totalorder %s803_s23, 3  ;;  %s186_s29 = sshll.u32 %s977_s1, 4  ;;  %s187_s29 = int_to_ptr.hbm [resolvable:$true] %s186_s29 }
   0x9   : > { %p882_p4 = por %p874_p1, %p54_p0  ;;  %s805_s6 = smov [#allocation6]  }
   0xa   : > { %p889_p5 = pnand %p520_p2, %p175_p3  ;;  %s188_s7 = sshll.u32 %s805_s6, 4  ;;  %s189_s7 = int_to_ptr.vmem [resolvable:$true] %s188_s7 }
   0xb   : > { %s203_s10 = sshll.u32 %s979_s3, 4  ;;  %s983_s11 = smov 128   ;;  %s204_s10 = int_to_ptr.hbm [resolvable:$true] %s203_s10 }
   0xc   : > { %p552_p6 = pneg %p889_p5  ;;  %s807_s12 = smov 8  }
   0xd   : > { %s808_s13 = smov [#allocation8]   ;;  %s29_s15 = sadd.s32 1, %s799_s22 }
   0xe   : > { %p553_p7 = pnand %p552_p6, %p874_p1  ;;  %s205_s14 = sshll.u32 %s808_s13, 4  ;;  %s206_s14 = int_to_ptr.vmem [resolvable:$true] %s205_s14 }
   0xf   : > { %s41_s16 = sadd.s32 1, %s791_s20  ;;  %p30_p8 = scmp.ge.s32.totalorder %s29_s15, 2 }
  0x10   : > { %555 = dma.hbm_to_vmem [thread:$0]  (!%p553_p7), %s187_s29, 512, %s189_s7, [#allocation7], %s983_s11, %s983_s11, %s807_s12  }
  0x11   : > { %558 = dma.hbm_to_vmem [thread:$0]  (!%p553_p7), %s204_s10, 512, %s206_s14, [#allocation7], %s983_s11, %s983_s11, %s807_s12  }
  0x12   : > { %p48_p9 = scmp.ne.s32.totalorder %s791_s20, %s787_s19  ;;  %p49_p10 = scmp.eq.s32.totalorder %s803_s23, 0 }
  0x13   : > { %p565_p11 = scmp.lt.s32.totalorder %s803_s23, 2  ;;  %s996_s15 = smov (%p30_p8, %s29_s15), 0 }
  0x14   : > { %p914_p12 = por %p49_p10, %p48_p9  ;;  %s222_s18 = sand.u32 1, %s791_s20  }
  0x15   : > { %s37_s27 = ssub.s32 %s799_s22, %s996_s15  ;;  %s524_s28 = sshll.u32 %s222_s18, 6 }
  0x16   : > { %p39_p13 = scmp.eq.s32.totalorder %s37_s27, 0  ;;  %s525_s29 = sshll.u32 %s799_s22, 3 }
  0x17   : > { %s233_s9 = scalar_lea.hbm %s976_s0, %s525_s29  ;;  %s226_s10 = scalar_lea.vmem [#allocation3], %s524_s28 }
  0x18   : > { %s923_s6 = scalar_select %p39_p13, %s791_s20, %s41_s16  }
  0x19   : > { %s236_s13 = sshll.u32 %s226_s10, 4  ;;  %s234_s14 = sshll.u32 %s233_s9, 4  ;;  %s237_s13 = int_to_ptr.vmem [resolvable:$true] %s236_s13  ;;  %s235_s14 = int_to_ptr.hbm [resolvable:$true] %s234_s14 }
  0x1a   : > { %p560_p0 = pnand %p565_p11, %p914_p12  ;;  %s223_s24 = scalar_lea.sflag [#allocation4], %s222_s18 }
  0x1b   : > { %s809_s11 = smov 256   ;;  %s988_s27 = smov 128  }
  0x1c   : > { %562 = dma.hbm_to_vmem [thread:$0]  (!%p560_p0), %s235_s14, 1024, %s237_s13, %s223_s24, %s809_s11, %s988_s27, %s807_s12  }
  0x1d   : > { %248 = sbr.rel (%p889_p5) target bundleno = 461 (0x1cd), region = 40  ;;  %s250_s16 = sand.u32 (!%p889_p5), 1, %s787_s19  }
  0x1e   : > { %s527_s29 = sshll.u32 (!%p889_p5), %s250_s16, 6  ;;  %s251_s28 = scalar_lea.sflag (!%p889_p5), [#allocation4], %s250_s16 }
  0x1f   : > { %s254_s7 = scalar_lea.vmem (!%p889_p5), [#allocation3], %s527_s29 }
  0x22   : > { %770 = dma.done.wait (%p882_p4), %s251_s28, 1024  }
  0x23   : > { %772 = vsyncadd (%p882_p4), %s251_s28, 4294966272 }
  0x24   : > { %774 = dma.done.wait (%p874_p1), [#allocation7], 1024  }
  0x25   : > { %776 = vsyncadd (%p874_p1), [#allocation7], 4294966272  ;;  %p530_p2 = scmp.ne.s32.totalorder %s795_s21, 0 }
  0x27   : > { %291 = sbr.rel (%p530_p2) target bundleno = 46 (0x2e), region = 56 }
  0x2c   : > { %vm292_vm0 = vcmask 254976   ;;  %v810_v0 = vmov 0.0  }
  0x2d   : > { %293 = vst.msk [vmem:[#allocation2] sm:$0x3] %vm292_vm0, %v810_v0 }
  0x2e PF: > { %v299_v1 = vld [vmem:[%s254_s7 + $0x20] sm:$0xff]  ;;  %v297_v3 = vld [vmem:[%s254_s7 + $0x10] sm:$0xff]  ;;  %v300_v4 = vld [vmem:[%s254_s7 + $0x28] sm:$0xff]  ;;  %v327_v11 = vlaneseq  ;;  %vm332_vm1 = vcmask 130112   ;;  %vm336_vm2 = vcmask 195712   ;;  %vm340_vm3 = vcmask 261312  }
  0x2f   : > { %v295_v2 = vld [vmem:[%s254_s7] sm:$0xff]  ;;  %311 = vadd.xlane.f32.xlu1 %v299_v1  ;;  %307 = vadd.xlane.f32.xlu2 %v297_v3  ;;  %v296_v5 = vld [vmem:[%s254_s7 + $0x8] sm:$0xff]  ;;  %v301_v6 = vld [vmem:[%s254_s7 + $0x30] sm:$0xff]  ;;  %vm349_vm4 = vcmask 1041409   ;;  %vm353_vm5 = vcmask 254976   ;;  %p531_p1 = scmp.ne.s32.totalorder %s795_s21, 1 }
  0x30   : > { %303 = vadd.xlane.f32.xlu0 %v295_v2  ;;  %v302_v7 = vld [vmem:[%s254_s7 + $0x38] sm:$0xff]  ;;  %v328_v13 = vand.u32 127, %v327_v11 }
  0x31   : > { %v298_v8 = vld [vmem:[%s254_s7 + $0x18] sm:$0xff] }
  0x32   : > { %v330_v14 = vadd.s32 4294967288, %v328_v13  ;;  %v334_v20 = vadd.s32 4294967280, %v328_v13  ;;  %v338_v23 = vadd.s32 4294967272, %v328_v13 }
  0x34   : > { %v294_v34 = vld [vmem:[#allocation2] sm:$0x3] }
  0x37   : > { %313 = vadd.xlane.f32.xlu1 %v300_v4  ;;  %315 = vadd.xlane.f32.xlu2 %v301_v6 }
  0x38   : > { %305 = vadd.xlane.f32.xlu0 %v296_v5 }
  0x3f   : > { %317 = vadd.xlane.f32.xlu1 %v302_v7 }
  0x40   : > { %309 = vadd.xlane.f32.xlu0 %v298_v8 }
  0xa2   : > { %v312_v9 = vpop.xlane.xlu1 %311  ;;  %v308_v12 = vpop.xlane.xlu2 %307 }
  0xa3   : > { %v304_v10 = vpop.xlane.xlu0 %303  ;;  %v342_v21 = vperm.slane %v312_v9, %v328_v13  ;;  %v335_v27 = vperm.slane %v308_v12, %v334_v20 }
  0xa4   : > { %v329_v22 = vperm.slane %v304_v10, %v328_v13 }
  0xaa   : > { %v314_v15 = vpop.xlane.xlu1 %313  ;;  %v316_v19 = vpop.xlane.xlu2 %315 }
  0xab   : > { %v306_v16 = vpop.xlane.xlu0 %305  ;;  %v343_v17 = vperm.slane %v314_v15, %v330_v14  ;;  %v345_v24 = vperm.slane %v316_v19, %v334_v20 }
  0xac   : > { %v331_v18 = vperm.slane %v306_v16, %v330_v14 }
  0xad   : > { %v344_v25 = vsel %vm332_vm1, %v343_v17, %v342_v21 }
  0xae   : > { %v333_v26 = vsel %vm332_vm1, %v331_v18, %v329_v22  ;;  %v346_v32 = vsel %vm336_vm2, %v345_v24, %v344_v25 }
  0xaf   : > { %v337_v33 = vsel %vm336_vm2, %v335_v27, %v333_v26 }
  0xb2   : > { %v318_v28 = vpop.xlane.xlu1 %317 }
  0xb3   : > { %v310_v29 = vpop.xlane.xlu0 %309  ;;  %v347_v30 = vperm.slane %v318_v28, %v338_v23 }
  0xb4   : > { %v339_v31 = vperm.slane %v310_v29, %v338_v23 }
  0xb5   : > { %v348_v35 = vsel %vm340_vm3, %v347_v30, %v346_v32 }
  0xb6   : > { %v341_v36 = vsel %vm340_vm3, %v339_v31, %v337_v33  ;;  %358 = sbr.rel (%p531_p1) target bundleno = 455 (0x1c7), region = 60 }
  0xb7   : > { %v350_v37 = vsel %vm349_vm4, %v348_v35, %v341_v36 }
  0xb8   : > { %v352_v38 = vadd.f32 %v350_v37, %v294_v34 }
  0xba   : > { %354 = vst.msk [vmem:[#allocation2] sm:$0x3] %vm353_vm5, %v352_v38 }
  0xbb   : > { %v364_v39 = vld [vmem:[#allocation6 + $0x18] sm:$0xff]  ;;  %v363_v40 = vld [vmem:[#allocation6 + $0x10] sm:$0xff]  ;;  %v362_v43 = vld [vmem:[#allocation6 + $0x8] sm:$0xff]  ;;  %vm369_vm6 = vcmask 261120  }
  0xbc   : > { %385 = vmatpush.msra.mxu0 %v364_v39  ;;  %v397_v42 = vld [vmem:[#allocation8 + $0x18] sm:$0xff]  ;;  %v361_v44 = vld [vmem:[#allocation6] sm:$0xff]  ;;  %v396_v46 = vld [vmem:[#allocation8 + $0x10] sm:$0xff] }
  0xbd   : > { %417 = vmatpush.msra.mxu1 %v397_v42  ;;  %v395_v47 = vld [vmem:[#allocation8 + $0x8] sm:$0xff]  ;;  %v394_v48 = vld [vmem:[#allocation8] sm:$0xff]  ;;  %v625_v49 = vld [vmem:[%s978_s2] ss:$0 sm:$0xff] }
  0xbe   : > { %386 = vmatpush.msra.mxu0 %v363_v40  ;;  %v626_v53 = vld [vmem:[%s980_s4] ss:$0 sm:$0xff] }
  0xbf   : > { %418 = vmatpush.msra.mxu1 %v396_v46 }
  0xc0   : > { %387 = vmatpush.msra.mxu0 %v362_v43 }
  0xc1   : > { %v359_v41 = vld [vmem:[#allocation2] sm:$0x3]  ;;  %419 = vmatpush.msra.mxu1 %v395_v47 }
  0xc2   : > { %v360_v45 = vmul.f32 0.00390625, %v359_v41  ;;  %388 = vmatpush.msra.mxu0 %v361_v44 }
  0xc3   : > { %420 = vmatpush.msra.mxu1 %v394_v48 }
  0xc4   : > { %532 = vmatmul.msk.f32.vlgmr.msra.gmra.mxu0 %vm369_vm6, %v360_v45 }
 0x141   : > { %v390_v50 = vpop.f32.mrf.mxu0 }
 0x142   : > { %v391_v51 = vadd.f32 %v625_v49, %v390_v50 }
 0x144   : > { %v393_v52 = vmax.f32 %v391_v51, 0.0 }
 0x146   : > { %533 = vmatmul.msk.f32.vlgmr.msra.gmra.mxu1 %vm369_vm6, %v393_v52 }
 0x1c3   : > { %v422_v54 = vpop.f32.mrf.mxu1 }
 0x1c4   : > { %v423_v55 = vadd.f32 %v626_v53, %v422_v54 }
 0x1c6   : > { %425 = vst [vmem:[#allocation9] sm:$0x3] %v423_v55 }
 0x1c7 PF: > { %s989_s30 = sadd.s32 4294967295, %s803_s23   ;;  %s436_s17 = sshll.u32 %s981_s5, 4  ;;  %s437_s17 = int_to_ptr.hbm [resolvable:$true] %s436_s17 }
 0x1c8   : > { %p568_p3 = scmp.eq.s32.totalorder %s989_s30, 1  ;;  %s811_s18 = smov [#allocation9]  }
 0x1c9   : > { %s434_s8 = sshll.u32 %s811_s18, 4  ;;  %s435_s8 = int_to_ptr.vmem [resolvable:$true] %s434_s8 }
 0x1ca   : > { %549 = dma.vmem_to_hbm [thread:$0]  (%p568_p3), %s435_s8, 32, %s437_s17, [#allocation5]  }
 0x1cb   : > { %778 = dma.done.wait (%p568_p3), [#allocation5], 32  }
 0x1cc   : > { %780 = vsyncadd (%p568_p3), [#allocation5], 4294967264 }
 0x1cd PF: > { %s20_s23 = sadd.s32 1, %s803_s23   ;;  %s990_s18 = smov %s787_s19 }
 0x1ce   : > { %p17_p4 = scmp.ge.s32.totalorder %s20_s23, 4   ;;  %s991_s19 = smov %s791_s20 }
 0x1cf   : > { %s992_s20 = smov %s923_s6  ;;  %s993_s21 = smov %s799_s22 }
 0x1d0   : > { %s994_s22 = smov %s996_s15  ;;  %19 = sbr.rel (!%p17_p4) target bundleno = 6 (0x6), region = 94 }
 0x1d5   :  { %450 = vsyncpa [#allocation4], 1 }
 0x1d6   :  { %452 = vsyncpa [#allocation4 + $0x1], 1 }
 0x1d7   :  { %453 = vsyncpa [#allocation7], 1 }
 0x1d8   :  { %454 = vsyncpa [#allocation5], 1 }
 0x1d9   :  { %456 = vsyncpa [#allocation5 + $0x1], 1 }

</bundles_post_ra>
